<compile_context>
chip_gen: v5e
topology: v5e:2x2
jax: 0.10.0
libtpu: 0.0.40
codegen_flags: <defaults>
</compile_context>

<pallas_src>
import functools

import jax
import jax.numpy as jnp
import numpy as np
from jax.experimental import pallas as pl
from jax.experimental.pallas import tpu as pltpu


# ----------------------------- activations -------------------------------- #

_ACTS = {
    "silu": lambda x: x * jax.nn.sigmoid(x),
    "swish": lambda x: x * jax.nn.sigmoid(x),
    "relu": lambda x: jnp.maximum(x, 0.0),
    "gelu": lambda x: jax.nn.gelu(x, approximate=False),   # nn.GELU() = exact erf
    "mish": lambda x: x * jnp.tanh(jax.nn.softplus(x)),
}


# ------------------------------- kernels ----------------------------------- #

def _te_kernel_cond(sample_ref, cond_ref, w1_ref, wc1_ref, b1_ref,
                    w2_ref, b2_ref, out_ref, *, act, post_act, n_tiles):
    wdt = w1_ref.dtype
    x = sample_ref[...].astype(wdt)
    c = cond_ref[...].astype(wdt)
    # linear_1 with cond_proj folded in: h = x @ W1 + c @ (W_cond @ W1) + b1.
    # Exact in real arithmetic; the folded product is rounded once more in the
    # bf16 path (covered by the bf16 test tolerance).
    h = jnp.dot(x, w1_ref[...], preferred_element_type=jnp.float32)
    h = h + jnp.dot(c, wc1_ref[...], preferred_element_type=jnp.float32)
    h = act(h + b1_ref[...])                          # f32: EUP sigmoid + VPU mul
    # linear_2 (this grid step's output-column tile)
    y = jnp.dot(h.astype(w2_ref.dtype), w2_ref[...],
                preferred_element_type=jnp.float32)
    y = y + (b2_ref[0] if n_tiles == 1 else b2_ref[pl.program_id(0)])
    if post_act is not None:
        y = post_act(y)
    out_ref[...] = y.astype(out_ref.dtype)


def _te_kernel_nocond(sample_ref, w1_ref, b1_ref, w2_ref, b2_ref, out_ref,
                      *, act, post_act, n_tiles):
    wdt = w1_ref.dtype
    x = sample_ref[...].astype(wdt)
    h = jnp.dot(x, w1_ref[...], preferred_element_type=jnp.float32)
    h = act(h + b1_ref[...])
    y = jnp.dot(h.astype(w2_ref.dtype), w2_ref[...],
                preferred_element_type=jnp.float32)
    y = y + (b2_ref[0] if n_tiles == 1 else b2_ref[pl.program_id(0)])
    if post_act is not None:
        y = post_act(y)
    out_ref[...] = y.astype(out_ref.dtype)

# Note: if a single-TensorCore chip ever needed n_tiles > 1 (out_dim too big
# for VMEM), h could be computed once into a VMEM scratch on the first grid
# step and reused ("arbitrary" axis).  With the 1-tile (2 on megacore) default
# selection below that case never triggers, so the recompute stays trivial.


# --------------------------- one-time weight prep --------------------------- #

def prepare_params(params, *, weight_dtype=jnp.bfloat16):
    """One-time parameter prep (call ONCE, reuse across forward calls).

    Casts the streamed weights to `weight_dtype` (bf16 halves the dominant HBM
    traffic), keeps biases in f32, and folds cond_proj into linear_1
    (Wc1 = W_cond @ W1) so the tiny K=cond_dim matmul is off the critical path.
    """
    f32 = jnp.float32
    prepped = {
        "w1": jnp.asarray(params["w1"], weight_dtype),
        "b1": jnp.asarray(params["b1"], f32),
        "w2": jnp.asarray(params["w2"], weight_dtype),
        "b2": jnp.asarray(params["b2"], f32),
    }
    if "w_cond" in params:
        prepped["wc1"] = (jnp.asarray(params["w_cond"], f32)
                          @ jnp.asarray(params["w1"], f32)).astype(weight_dtype)
    return prepped


# ----------------------------- tiling selection ----------------------------- #

def _default_num_tiles():
    # Two output tiles only pay off on chips whose 2 TensorCores share the
    # "parallel" grid axis (v4 / v5p / v7x); single-TC chips want one tile.
    try:
        kind = jax.devices()[0].device_kind.lower()
    except Exception:
        return 1
    return 2 if ("v4" in kind or "v5p" in kind or "7" in kind) else 1


def _choose_tile_n(out_dim, num_tiles, per_col_bytes, stream_budget):
    """Largest output-column tile (fewest grid steps) whose double-buffered
    streamed bytes fit `stream_budget`; an explicit even split (megacore) is
    honoured when it stays 256-/128-aligned."""
    def fits(tn):
        return 2 * tn * per_col_bytes <= stream_budget

    if num_tiles > 1 and out_dim % num_tiles == 0:
        tn = out_dim // num_tiles
        if (tn % 256 == 0 or tn % 128 == 0) and fits(tn):
            return tn
    if fits(out_dim):
        return out_dim
    for align in (256, 128):            # otherwise: fewest aligned tiles that fit
        if out_dim % align:
            continue
        units = out_dim // align
        for n in range(2, units + 1):
            if units % n == 0 and fits((units // n) * align):
                return (units // n) * align
    return out_dim


# --------------------------------- wrapper ---------------------------------- #

def timestep_embedding(sample, prepped, condition=None, *,
                       act_fn="silu", post_act_fn=None,
                       tile_n=None, num_tiles=None):
    """Fused TimestepEmbedding forward.

    sample:    [B, in_channels]
    condition: [B, cond_proj_dim] or None
    prepped:   output of prepare_params() (weights cast once, cond_proj folded)
    """
    B, in_ch = sample.shape
    w1, b1, w2, b2 = prepped["w1"], prepped["b1"], prepped["w2"], prepped["b2"]
    ted, out_dim = w1.shape[1], w2.shape[1]
    weight_dtype = w1.dtype
    out_dtype = sample.dtype
    w_isz = jnp.dtype(weight_dtype).itemsize
    o_isz = jnp.dtype(out_dtype).itemsize
    has_cond = condition is not None
    if has_cond and "wc1" not in prepped:
        raise ValueError("condition passed but params were prepared without w_cond")

    # ---- pad batch to the in-kernel LHS sublane multiple (16 bf16 / 8 f32) ----
    sub = 8 * max(1, 4 // w_isz)
    B_pad = max(sub, -(-B // sub) * sub)
    sample_p = jnp.pad(sample, ((0, B_pad - B), (0, 0))) if B_pad != B else sample
    cond_p = None
    if has_cond:
        cond_p = (jnp.pad(condition, ((0, B_pad - B), (0, 0)))
                  if B_pad != B else condition)

    # ---- output-column tiling of linear_2 ----
    if tile_n is not None:
        tn = int(tile_n)
    else:
        nt = num_tiles if num_tiles is not None else _default_num_tiles()
        tn = _choose_tile_n(out_dim, nt,
                            per_col_bytes=ted * w_isz + B_pad * o_isz,
                            stream_budget=20 << 20)
    assert out_dim % tn == 0, f"tile width {tn} must divide out_dim {out_dim}"
    n_tiles = out_dim // tn

    # b2 stays fully resident; reshape so the kernel selects its tile by grid id.
    b2_t = b2.reshape(n_tiles, 1, tn)

    act = _ACTS[act_fn]
    post_act = _ACTS[post_act_fn] if post_act_fn is not None else None

    if has_cond:
        wc1 = prepped["wc1"]
        args = (sample_p, cond_p, w1, wc1, b1, w2, b2_t)
        residents = (sample_p, cond_p, w1, wc1, b1, b2_t)
        kernel = functools.partial(_te_kernel_cond, act=act, post_act=post_act,
                                   n_tiles=n_tiles)
        cond_flops = 2 * B_pad * cond_p.shape[1] * ted
    else:
        args = (sample_p, w1, b1, w2, b2_t)
        residents = (sample_p, w1, b1, b2_t)
        kernel = functools.partial(_te_kernel_nocond, act=act, post_act=post_act,
                                   n_tiles=n_tiles)
        cond_flops = 0

    out_shape = jax.ShapeDtypeStruct((B_pad, out_dim), out_dtype)
    out_specs = pl.BlockSpec((B_pad, tn), lambda j: (0, j))
    w2_spec = pl.BlockSpec((ted, tn), lambda j: (0, j))        # streamed weights

    # ---- cost estimate (linear_1 + cond fold recomputed per tile) ----
    flops = n_tiles * (2 * B_pad * in_ch * ted + cond_flops) + 2 * B_pad * ted * out_dim
    transcendentals = n_tiles * B_pad * ted
    bytes_accessed = (sum(int(a.size) * a.dtype.itemsize for a in args)
                      + B_pad * out_dim * o_isz)

    def _run(single_buffer):
        def resident_spec(arr):
            zeros = (0,) * arr.ndim
            if single_buffer:
                return pl.BlockSpec(arr.shape, lambda j, z=zeros: z,
                                    pipeline_mode=pl.Buffered(1))
            return pl.BlockSpec(arr.shape, lambda j, z=zeros: z)

        if has_cond:
            in_specs = [resident_spec(sample_p), resident_spec(cond_p),
                        resident_spec(w1), resident_spec(wc1),
                        resident_spec(b1), w2_spec, resident_spec(b2_t)]
        else:
            in_specs = [resident_spec(sample_p), resident_spec(w1),
                        resident_spec(b1), w2_spec, resident_spec(b2_t)]

        # Tight VMEM request: residents (1x or 2x buffered) + double-buffered
        # streamed tiles + f32 intermediates + slack.  No blanket 48 MiB cap.
        resident_bytes = sum(int(a.size) * a.dtype.itemsize for a in residents)
        resident_bytes *= 1 if single_buffer else 2
        streamed_bytes = 2 * (ted * tn * w_isz + B_pad * tn * o_isz)
        work_bytes = 5 * B_pad * ted * 4 + 2 * B_pad * tn * 4
        vmem_limit = int(min(resident_bytes + streamed_bytes + work_bytes + (4 << 20),
                             100 << 20))

        return pl.pallas_call(
            kernel,
            out_shape=out_shape,
            grid=(n_tiles,),
            in_specs=in_specs,
            out_specs=out_specs,
            compiler_params=pltpu.CompilerParams(
                dimension_semantics=("parallel",),   # independent tiles -> both TCs
                vmem_limit_bytes=vmem_limit),
            cost_estimate=pl.CostEstimate(
                flops=int(flops),
                transcendentals=int(transcendentals),
                bytes_accessed=int(bytes_accessed)),
        )(*args)

    try:
        out = _run(single_buffer=True)
    except Exception:
        # pipeline_mode=pl.Buffered(1) not supported by this Pallas build:
        # fall back to default double-buffered resident inputs.
        out = _run(single_buffer=False)

    return out[:B]


# --------------------------- param init (synthetic) ------------------------- #

def init_params(key, in_channels, time_embed_dim, out_dim=None,
                cond_proj_dim=None, dtype=jnp.float32):
    """Deterministic PyTorch-Linear-style init (uniform +-1/sqrt(fan_in))."""
    out_dim = time_embed_dim if out_dim is None else out_dim
    ks = jax.random.split(key, 5)

    def lin(kw, kb, fan_in, fan_out, bias=True):
        bound = 1.0 / np.sqrt(fan_in)
        w = jax.random.uniform(kw, (fan_in, fan_out), dtype, -bound, bound)
        b = (jax.random.uniform(kb, (1, fan_out), dtype, -bound, bound)
             if bias else None)
        return w, b

    w1, b1 = lin(ks[0], ks[1], in_channels, time_embed_dim)
    w2, b2 = lin(ks[2], ks[3], time_embed_dim, out_dim)
    params = {"w1": w1, "b1": b1, "w2": w2, "b2": b2}
    if cond_proj_dim is not None:
        w_cond, _ = lin(ks[4], ks[4], cond_proj_dim, in_channels, bias=False)
        params["w_cond"] = w_cond
    return params


# -------------------------------- reference --------------------------------- #

def reference(sample, params, condition=None, act_fn="silu", post_act_fn=None):
    """PyTorch-faithful f32 forward."""
    x = sample.astype(jnp.float32)
    if condition is not None:
        x = x + condition.astype(jnp.float32) @ params["w_cond"].astype(jnp.float32)
    h = x @ params["w1"].astype(jnp.float32) + params["b1"].astype(jnp.float32)
    h = _ACTS[act_fn](h)
    y = h @ params["w2"].astype(jnp.float32) + params["b2"].astype(jnp.float32)
    if post_act_fn is not None:
        y = _ACTS[post_act_fn](y)
    return y.astype(sample.dtype)


# ---------------------------------- main ------------------------------------ #

if __name__ == "__main__":
    key = jax.random.PRNGKey(0)
    k_s, k_c, k_p = jax.random.split(key, 3)

    B = 2
    in_channels = 32
    time_embed_dim = 256
    cond_proj_dim = 16

    sample = jax.random.normal(k_s, (B, in_channels), jnp.float32)
    condition = jax.random.normal(k_c, (B, cond_proj_dim), jnp.float32)
    params = init_params(k_p, in_channels, time_embed_dim,
                         cond_proj_dim=cond_proj_dim)

    ref_cond = reference(sample, params, condition)
    ref_plain = reference(sample, params, None)

    # One-time weight prep (the per-call casts/folds were the main wall-clock
    # cost in the previous version; now paid once).
    prepped_bf16 = jax.block_until_ready(prepare_params(params))
    prepped_f32 = jax.block_until_ready(
        prepare_params(params, weight_dtype=jnp.float32))

    # 1) Default bf16-weight streaming path, with condition, auto tiling
    #    (1 tile; 2 tiles only on megacore chips).
    out_bf16 = jax.block_until_ready(
        timestep_embedding(sample, prepped_bf16, condition))
    assert out_bf16.shape == (B, time_embed_dim)
    np.testing.assert_allclose(np.asarray(out_bf16), np.asarray(ref_cond),
                               rtol=5e-2, atol=5e-2)

    # 2) f32-weight path with a forced 2-tile grid (tile_n=128): validates the
    #    column tiling, in-kernel b2 tile indexing and cond folding to tight
    #    tolerance.
    out_f32 = jax.block_until_ready(
        timestep_embedding(sample, prepped_f32, condition, tile_n=128))
    np.testing.assert_allclose(np.asarray(out_f32), np.asarray(ref_cond),
                               rtol=1e-4, atol=1e-4)

    # 3) No-condition (default diffusers) path, bf16 weights, single tile.
    out_plain = jax.block_until_ready(
        timestep_embedding(sample, prepped_bf16, None, num_tiles=1))
    np.testing.assert_allclose(np.asarray(out_plain), np.asarray(ref_plain),
                               rtol=5e-2, atol=5e-2)

    print("KERNEL_OK")
</pallas_src>

<mosaic_0001>
module attributes {stable_mosaic.version = 11 : i64} {
  func.func @_te_kernel_cond(%arg0: i32, %arg1: memref<16x32xf32, #tpu.memory_space<vmem>>, %arg2: memref<16x16xf32, #tpu.memory_space<vmem>>, %arg3: memref<32x256xbf16, #tpu.memory_space<vmem>>, %arg4: memref<16x256xbf16, #tpu.memory_space<vmem>>, %arg5: memref<1x256xf32, #tpu.memory_space<vmem>>, %arg6: memref<256x256xbf16, #tpu.memory_space<vmem>>, %arg7: memref<1x1x256xf32, #tpu.memory_space<vmem>>, %arg8: memref<16x256xf32, #tpu.memory_space<vmem>>) attributes {dimension_semantics = [#tpu.dimension_semantics<parallel>], iteration_bounds = array<i64: 1>, scalar_prefetch = 0 : i64, scratch_operands = 0 : i64, tpu.core_type = #tpu.core_type<tc>, window_params = [{pipeline_mode = #tpu.pipeline_mode<synchronous>, transform_indices = @transform_0, window_bounds = array<i64: 16, 32>}, {pipeline_mode = #tpu.pipeline_mode<synchronous>, transform_indices = @transform_1, window_bounds = array<i64: 16, 16>}, {pipeline_mode = #tpu.pipeline_mode<synchronous>, transform_indices = @transform_2, window_bounds = array<i64: 32, 256>}, {pipeline_mode = #tpu.pipeline_mode<synchronous>, transform_indices = @transform_3, window_bounds = array<i64: 16, 256>}, {pipeline_mode = #tpu.pipeline_mode<synchronous>, transform_indices = @transform_4, window_bounds = array<i64: 1, 256>}, {transform_indices = @transform_5, window_bounds = array<i64: 256, 256>}, {pipeline_mode = #tpu.pipeline_mode<synchronous>, transform_indices = @transform_6, window_bounds = array<i64: 1, 1, 256>}, {transform_indices = @transform_7, window_bounds = array<i64: 16, 256>}]} {
    %c0 = arith.constant 0 : index
    %c0_0 = arith.constant 0 : index
    %0 = vector.load %arg1[%c0, %c0_0] : memref<16x32xf32, #tpu.memory_space<vmem>>, vector<16x32xf32>
    %1 = arith.truncf %0 : vector<16x32xf32> to vector<16x32xbf16>
    %c0_1 = arith.constant 0 : index
    %c0_2 = arith.constant 0 : index
    %2 = vector.load %arg2[%c0_1, %c0_2] : memref<16x16xf32, #tpu.memory_space<vmem>>, vector<16x16xf32>
    %3 = arith.truncf %2 : vector<16x16xf32> to vector<16x16xbf16>
    %c0_3 = arith.constant 0 : index
    %c0_4 = arith.constant 0 : index
    %4 = vector.load %arg3[%c0_3, %c0_4] : memref<32x256xbf16, #tpu.memory_space<vmem>>, vector<32x256xbf16>
    %cst = arith.constant dense<0.000000e+00> : vector<16x256xf32>
    %5 = tpu.matmul %1, %4, %cst {dimension_numbers = #tpu.dot_dimension_numbers<[1], [0], [0], [1], [0, 0, 1, 1], [], []>} : vector<16x32xbf16>, vector<32x256xbf16>, vector<16x256xf32> -> vector<16x256xf32>
    %c0_5 = arith.constant 0 : index
    %c0_6 = arith.constant 0 : index
    %6 = vector.load %arg4[%c0_5, %c0_6] : memref<16x256xbf16, #tpu.memory_space<vmem>>, vector<16x256xbf16>
    %cst_7 = arith.constant dense<0.000000e+00> : vector<16x256xf32>
    %7 = tpu.matmul %3, %6, %cst_7 {dimension_numbers = #tpu.dot_dimension_numbers<[1], [0], [0], [1], [0, 0, 1, 1], [], []>} : vector<16x16xbf16>, vector<16x256xbf16>, vector<16x256xf32> -> vector<16x256xf32>
    %8 = arith.addf %5, %7 : vector<16x256xf32>
    %c0_8 = arith.constant 0 : index
    %c0_9 = arith.constant 0 : index
    %9 = vector.load %arg5[%c0_8, %c0_9] : memref<1x256xf32, #tpu.memory_space<vmem>>, vector<1x256xf32>
    %10 = vector.broadcast %9 : vector<1x256xf32> to vector<16x256xf32>
    %11 = arith.addf %8, %10 : vector<16x256xf32>
    %12 = arith.negf %11 : vector<16x256xf32>
    %13 = math.exp %12 : vector<16x256xf32>
    %cst_10 = arith.constant 1.000000e+00 : f32
    %14 = vector.broadcast %cst_10 : f32 to vector<16x256xf32>
    %15 = arith.addf %14, %13 : vector<16x256xf32>
    %16 = arith.divf %14, %15 : vector<16x256xf32>
    %17 = arith.mulf %11, %16 : vector<16x256xf32>
    %18 = arith.truncf %17 : vector<16x256xf32> to vector<16x256xbf16>
    %c0_11 = arith.constant 0 : index
    %c0_12 = arith.constant 0 : index
    %19 = vector.load %arg6[%c0_11, %c0_12] : memref<256x256xbf16, #tpu.memory_space<vmem>>, vector<256x256xbf16>
    %cst_13 = arith.constant dense<0.000000e+00> : vector<16x256xf32>
    %20 = tpu.matmul %18, %19, %cst_13 {dimension_numbers = #tpu.dot_dimension_numbers<[1], [0], [0], [1], [0, 0, 1, 1], [], []>} : vector<16x256xbf16>, vector<256x256xbf16>, vector<16x256xf32> -> vector<16x256xf32>
    %c0_14 = arith.constant 0 : index
    %c0_15 = arith.constant 0 : index
    %c0_16 = arith.constant 0 : index
    %21 = vector.load %arg7[%c0_14, %c0_15, %c0_16] : memref<1x1x256xf32, #tpu.memory_space<vmem>>, vector<1x1x256xf32>
    %22 = vector.shape_cast %21 : vector<1x1x256xf32> to vector<1x256xf32>
    %23 = vector.broadcast %22 : vector<1x256xf32> to vector<16x256xf32>
    %24 = arith.addf %20, %23 : vector<16x256xf32>
    %c0_17 = arith.constant 0 : index
    %c0_18 = arith.constant 0 : index
    %25 = vector.load %arg8[%c0_17, %c0_18] : memref<16x256xf32, #tpu.memory_space<vmem>>, vector<16x256xf32>
    tpu.vector_store %arg8[%c0_17, %c0_18], %24 {strides = array<i32>} : memref<16x256xf32, #tpu.memory_space<vmem>>, vector<16x256xf32>,
    return
  }
  func.func @transform_0(%arg0: i32) -> (i32, i32) {
    %c0_i32 = arith.constant 0 : i32
    %c0_i32_0 = arith.constant 0 : i32
    %c0_i32_1 = arith.constant 0 : i32
    return %c0_i32, %c0_i32_0 : i32, i32
  }
  func.func @transform_1(%arg0: i32) -> (i32, i32) {
    %c0_i32 = arith.constant 0 : i32
    %c0_i32_0 = arith.constant 0 : i32
    %c0_i32_1 = arith.constant 0 : i32
    return %c0_i32, %c0_i32_0 : i32, i32
  }
  func.func @transform_2(%arg0: i32) -> (i32, i32) {
    %c0_i32 = arith.constant 0 : i32
    %c0_i32_0 = arith.constant 0 : i32
    %c0_i32_1 = arith.constant 0 : i32
    return %c0_i32, %c0_i32_0 : i32, i32
  }
  func.func @transform_3(%arg0: i32) -> (i32, i32) {
    %c0_i32 = arith.constant 0 : i32
    %c0_i32_0 = arith.constant 0 : i32
    %c0_i32_1 = arith.constant 0 : i32
    return %c0_i32, %c0_i32_0 : i32, i32
  }
  func.func @transform_4(%arg0: i32) -> (i32, i32) {
    %c0_i32 = arith.constant 0 : i32
    %c0_i32_0 = arith.constant 0 : i32
    %c0_i32_1 = arith.constant 0 : i32
    return %c0_i32, %c0_i32_0 : i32, i32
  }
  func.func @transform_5(%arg0: i32) -> (i32, i32) {
    %c0_i32 = arith.constant 0 : i32
    %c0_i32_0 = arith.constant 0 : i32
    return %c0_i32, %arg0 : i32, i32
  }
  func.func @transform_6(%arg0: i32) -> (i32, i32, i32) {
    %c0_i32 = arith.constant 0 : i32
    %c0_i32_0 = arith.constant 0 : i32
    %c0_i32_1 = arith.constant 0 : i32
    %c0_i32_2 = arith.constant 0 : i32
    return %c0_i32, %c0_i32_0, %c0_i32_1 : i32, i32, i32
  }
  func.func @transform_7(%arg0: i32) -> (i32, i32) {
    %c0_i32 = arith.constant 0 : i32
    %c0_i32_0 = arith.constant 0 : i32
    return %c0_i32, %arg0 : i32, i32
  }
}

module attributes {stable_mosaic.version = 11 : i64} {
  func.func @_te_kernel_cond(%arg0: i32, %arg1: memref<16x32xf32, #tpu.memory_space<vmem>>, %arg2: memref<16x16xf32, #tpu.memory_space<vmem>>, %arg3: memref<32x256xbf16, #tpu.memory_space<vmem>>, %arg4: memref<16x256xbf16, #tpu.memory_space<vmem>>, %arg5: memref<1x256xf32, #tpu.memory_space<vmem>>, %arg6: memref<256x256xbf16, #tpu.memory_space<vmem>>, %arg7: memref<1x1x256xf32, #tpu.memory_space<vmem>>, %arg8: memref<16x256xf32, #tpu.memory_space<vmem>>) attributes {dimension_semantics = [#tpu.dimension_semantics<parallel>], iteration_bounds = array<i64: 1>, scalar_prefetch = 0 : i64, scratch_operands = 0 : i64, tpu.core_type = #tpu.core_type<tc>, window_params = [{pipeline_mode = #tpu.pipeline_mode<synchronous>, transform_indices = @transform_0, window_bounds = array<i64: 16, 32>}, {pipeline_mode = #tpu.pipeline_mode<synchronous>, transform_indices = @transform_1, window_bounds = array<i64: 16, 16>}, {pipeline_mode = #tpu.pipeline_mode<synchronous>, transform_indices = @transform_2, window_bounds = array<i64: 32, 256>}, {pipeline_mode = #tpu.pipeline_mode<synchronous>, transform_indices = @transform_3, window_bounds = array<i64: 16, 256>}, {pipeline_mode = #tpu.pipeline_mode<synchronous>, transform_indices = @transform_4, window_bounds = array<i64: 1, 256>}, {transform_indices = @transform_5, window_bounds = array<i64: 256, 256>}, {pipeline_mode = #tpu.pipeline_mode<synchronous>, transform_indices = @transform_6, window_bounds = array<i64: 1, 1, 256>}, {transform_indices = @transform_7, window_bounds = array<i64: 16, 256>}]} {
    %c0 = arith.constant 0 : index
    %c0_0 = arith.constant 0 : index
    %0 = vector.load %arg1[%c0, %c0_0] : memref<16x32xf32, #tpu.memory_space<vmem>>, vector<16x32xf32>
    %1 = arith.truncf %0 : vector<16x32xf32> to vector<16x32xbf16>
    %c0_1 = arith.constant 0 : index
    %c0_2 = arith.constant 0 : index
    %2 = vector.load %arg2[%c0_1, %c0_2] : memref<16x16xf32, #tpu.memory_space<vmem>>, vector<16x16xf32>
    %3 = arith.truncf %2 : vector<16x16xf32> to vector<16x16xbf16>
    %c0_3 = arith.constant 0 : index
    %c0_4 = arith.constant 0 : index
    %4 = vector.load %arg3[%c0_3, %c0_4] : memref<32x256xbf16, #tpu.memory_space<vmem>>, vector<32x256xbf16>
    %cst = arith.constant dense<0.000000e+00> : vector<16x256xf32>
    %5 = tpu.matmul %1, %4, %cst {dimension_numbers = #tpu.dot_dimension_numbers<[1], [0], [0], [1], [0, 0, 1, 1], [], []>} : vector<16x32xbf16>, vector<32x256xbf16>, vector<16x256xf32> -> vector<16x256xf32>
    %c0_5 = arith.constant 0 : index
    %c0_6 = arith.constant 0 : index
    %6 = vector.load %arg4[%c0_5, %c0_6] : memref<16x256xbf16, #tpu.memory_space<vmem>>, vector<16x256xbf16>
    %cst_7 = arith.constant dense<0.000000e+00> : vector<16x256xf32>
    %7 = tpu.matmul %3, %6, %cst_7 {dimension_numbers = #tpu.dot_dimension_numbers<[1], [0], [0], [1], [0, 0, 1, 1], [], []>} : vector<16x16xbf16>, vector<16x256xbf16>, vector<16x256xf32> -> vector<16x256xf32>
    %8 = arith.addf %5, %7 : vector<16x256xf32>
    %c0_8 = arith.constant 0 : index
    %c0_9 = arith.constant 0 : index
    %9 = vector.load %arg5[%c0_8, %c0_9] : memref<1x256xf32, #tpu.memory_space<vmem>>, vector<1x256xf32>
    %10 = vector.broadcast %9 : vector<1x256xf32> to vector<16x256xf32>
    %11 = arith.addf %8, %10 : vector<16x256xf32>
    %12 = arith.negf %11 : vector<16x256xf32>
    %13 = math.exp %12 : vector<16x256xf32>
    %cst_10 = arith.constant 1.000000e+00 : f32
    %14 = vector.broadcast %cst_10 : f32 to vector<16x256xf32>
    %15 = arith.addf %14, %13 : vector<16x256xf32>
    %16 = arith.divf %14, %15 : vector<16x256xf32>
    %17 = arith.mulf %11, %16 : vector<16x256xf32>
    %18 = arith.truncf %17 : vector<16x256xf32> to vector<16x256xbf16>
    %c0_11 = arith.constant 0 : index
    %c0_12 = arith.constant 0 : index
    %19 = vector.load %arg6[%c0_11, %c0_12] : memref<256x256xbf16, #tpu.memory_space<vmem>>, vector<256x256xbf16>
    %cst_13 = arith.constant dense<0.000000e+00> : vector<16x256xf32>
    %20 = tpu.matmul %18, %19, %cst_13 {dimension_numbers = #tpu.dot_dimension_numbers<[1], [0], [0], [1], [0, 0, 1, 1], [], []>} : vector<16x256xbf16>, vector<256x256xbf16>, vector<16x256xf32> -> vector<16x256xf32>
    %c0_14 = arith.constant 0 : index
    %c0_15 = arith.constant 0 : index
    %c0_16 = arith.constant 0 : index
    %21 = vector.load %arg7[%c0_14, %c0_15, %c0_16] : memref<1x1x256xf32, #tpu.memory_space<vmem>>, vector<1x1x256xf32>
    %22 = vector.shape_cast %21 : vector<1x1x256xf32> to vector<1x256xf32>
    %23 = vector.broadcast %22 : vector<1x256xf32> to vector<16x256xf32>
    %24 = arith.addf %20, %23 : vector<16x256xf32>
    %c0_17 = arith.constant 0 : index
    %c0_18 = arith.constant 0 : index
    %25 = vector.load %arg8[%c0_17, %c0_18] : memref<16x256xf32, #tpu.memory_space<vmem>>, vector<16x256xf32>
    tpu.vector_store %arg8[%c0_17, %c0_18], %24 {strides = array<i32>} : memref<16x256xf32, #tpu.memory_space<vmem>>, vector<16x256xf32>,
    return
  }
  func.func @transform_0(%arg0: i32) -> (i32, i32) {
    %c0_i32 = arith.constant 0 : i32
    %c0_i32_0 = arith.constant 0 : i32
    %c0_i32_1 = arith.constant 0 : i32
    return %c0_i32, %c0_i32_0 : i32, i32
  }
  func.func @transform_1(%arg0: i32) -> (i32, i32) {
    %c0_i32 = arith.constant 0 : i32
    %c0_i32_0 = arith.constant 0 : i32
    %c0_i32_1 = arith.constant 0 : i32
    return %c0_i32, %c0_i32_0 : i32, i32
  }
  func.func @transform_2(%arg0: i32) -> (i32, i32) {
    %c0_i32 = arith.constant 0 : i32
    %c0_i32_0 = arith.constant 0 : i32
    %c0_i32_1 = arith.constant 0 : i32
    return %c0_i32, %c0_i32_0 : i32, i32
  }
  func.func @transform_3(%arg0: i32) -> (i32, i32) {
    %c0_i32 = arith.constant 0 : i32
    %c0_i32_0 = arith.constant 0 : i32
    %c0_i32_1 = arith.constant 0 : i32
    return %c0_i32, %c0_i32_0 : i32, i32
  }
  func.func @transform_4(%arg0: i32) -> (i32, i32) {
    %c0_i32 = arith.constant 0 : i32
    %c0_i32_0 = arith.constant 0 : i32
    %c0_i32_1 = arith.constant 0 : i32
    return %c0_i32, %c0_i32_0 : i32, i32
  }
  func.func @transform_5(%arg0: i32) -> (i32, i32) {
    %c0_i32 = arith.constant 0 : i32
    %c0_i32_0 = arith.constant 0 : i32
    return %c0_i32, %arg0 : i32, i32
  }
  func.func @transform_6(%arg0: i32) -> (i32, i32, i32) {
    %c0_i32 = arith.constant 0 : i32
    %c0_i32_0 = arith.constant 0 : i32
    %c0_i32_1 = arith.constant 0 : i32
    %c0_i32_2 = arith.constant 0 : i32
    return %c0_i32, %c0_i32_0, %c0_i32_1 : i32, i32, i32
  }
  func.func @transform_7(%arg0: i32) -> (i32, i32) {
    %c0_i32 = arith.constant 0 : i32
    %c0_i32_0 = arith.constant 0 : i32
    return %c0_i32, %arg0 : i32, i32
  }
}

</mosaic_0001>

<bundles_post_ra>
// kernel: tpu_custom_call.1
= control target key start
LH: loop header
LB: loop body
LE: loop exit
PB: predicated region body
PF: predicated region fallthrough
CT: control target
= control target key end

     0   :  { %12 = vsyncpa [#allocation3], 0  ;;  %s1074_s0 = inlined_call_operand.hbm [shape: f32[16,32], index: 0, kind: input, shape index: {}]   ;;  %s1075_s1 = inlined_call_operand.hbm [shape: f32[16,16], index: 1, kind: input, shape index: {}]   ;;  %s1076_s2 = inlined_call_operand.hbm [shape: bf16[32,256], index: 2, kind: input, shape index: {}]   ;;  %s1077_s3 = inlined_call_operand.hbm [shape: bf16[16,256], index: 3, kind: input, shape index: {}]   ;;  %s1078_s4 = inlined_call_operand.vmem [shape: f32[1,256], index: 4, kind: input, shape index: {}]   ;;  %s1079_s5 = inlined_call_operand.hbm [shape: bf16[256,256], index: 5, kind: input, shape index: {}]   ;;  %s1080_s6 = inlined_call_operand.vmem [shape: f32[1,1,256], index: 6, kind: input, shape index: {}]   ;;  %s1081_s7 = inlined_call_operand.hbm [shape: f32[16,256], index: 7, kind: output, shape index: {}]  }
   0x1   :  { %13 = vsyncpa [#allocation6], 0 }
   0x2   :  { %14 = vsyncpa [#allocation9], 0 }
   0x3   :  { %15 = vsyncpa [#allocation4], 0  ;;  %s33_s26 = sshll.u32 %s1075_s1, 4  ;;  %s959_s27 = smov [#allocation5]   ;;  %s34_s26 = int_to_ptr.hbm [resolvable:$true] %s33_s26 }
   0x4   :  { %s35_s28 = sshll.u32 %s959_s27, 4  ;;  %s59_s8 = sshll.u32 %s1077_s3, 4  ;;  %s36_s28 = int_to_ptr.vmem [resolvable:$true] %s35_s28  ;;  %s60_s8 = int_to_ptr.hbm [resolvable:$true] %s59_s8 }
   0x5   :  { %s960_s9 = smov 128   ;;  %s961_s10 = smov 8  }
   0x6   :  { %41 = dma.hbm_to_vmem [thread:$0]  %s34_s26, 256, %s36_s28, [#allocation6], %s960_s9, %s960_s9, %s961_s10  }
   0x7   :  { %s962_s11 = smov [#allocation8]   ;;  %s20_s15 = sshll.u32 %s1074_s0, 4  ;;  %s21_s15 = int_to_ptr.hbm [resolvable:$true] %s20_s15 }
   0x8   :  { %s61_s12 = sshll.u32 %s962_s11, 4  ;;  %s46_s17 = sshll.u32 %s1076_s2, 4  ;;  %s62_s12 = int_to_ptr.vmem [resolvable:$true] %s61_s12  ;;  %s47_s17 = int_to_ptr.hbm [resolvable:$true] %s46_s17 }
   0x9   :  { %67 = dma.hbm_to_vmem [thread:$0]  %s60_s8, 256, %s62_s12, [#allocation9], %s960_s9, %s960_s9, %s961_s10  }
   0xa   :  { %s963_s18 = smov [#allocation2]   ;;  %s964_s3 = smov [#allocation7]  }
   0xb   :  { %s22_s19 = sshll.u32 %s963_s18, 4  ;;  %s48_s20 = sshll.u32 %s964_s3, 4  ;;  %s23_s19 = int_to_ptr.vmem [resolvable:$true] %s22_s19  ;;  %s49_s20 = int_to_ptr.vmem [resolvable:$true] %s48_s20 }
   0xc   :  { %28 = dma.hbm_to_vmem [thread:$0]  %s21_s15, 256, %s23_s19, [#allocation3], %s960_s9, %s960_s9, %s961_s10  }
   0xd   :  { %s74_s23 = sshll.u32 %s1079_s5, 4  ;;  %s965_s0 = smov [#allocation10]   ;;  %s75_s23 = int_to_ptr.hbm [resolvable:$true] %s74_s23 }
   0xe   :  { %54 = dma.hbm_to_vmem [thread:$0]  %s47_s17, 512, %s49_s20, [#allocation6], %s960_s9, %s960_s9, %s961_s10  }
   0xf   :  { %s76_s24 = sshll.u32 %s965_s0, 4  ;;  %s77_s24 = int_to_ptr.vmem [resolvable:$true] %s76_s24 }
  0x10   :  { %82 = dma.hbm_to_vmem [thread:$0]  %s75_s23, 4096, %s77_s24, [#allocation9], %s960_s9, %s960_s9, %s961_s10  }
  0x11   :  { %951 = dma.done.wait [#allocation3], 256  }
  0x12   :  { %952 = vsyncadd [#allocation3], 4294967040 }
  0x13   :  { %953 = dma.done.wait [#allocation6], 768  }
  0x14   :  { %954 = vsyncadd [#allocation6], 4294966528 }
  0x15   :  { %955 = dma.done.wait [#allocation9], 4352  }
  0x16   :  { %956 = vsyncadd [#allocation9], 4294962944  ;;  %v603_v0 = vld [vmem:[#allocation7 + $0x10] sm:$0xf]  ;;  %v746_v1 = vld [vmem:[#allocation7 + $0x14] sm:$0xf0] }
  0x17   :  { %v745_v2 = vld [vmem:[#allocation7 + $0x14] sm:$0xf]  ;;  %v604_v3 = vor.u32 %v746_v1, %v603_v0  ;;  %v605_v4 = vld [vmem:[#allocation7 + $0x18] sm:$0xf0]  ;;  %v585_v5 = vld [vmem:[#allocation8] sm:$0xf] }
  0x18   :  { %v748_v6 = vld [vmem:[#allocation8 + $0x4] sm:$0xf0]  ;;  %v608_v7 = vor.u32 %v745_v2, %v605_v4  ;;  %v747_v9 = vld [vmem:[#allocation8 + $0x4] sm:$0xf]  ;;  %v587_v10 = vld [vmem:[#allocation8 + $0x8] sm:$0xf0] }
  0x19   :  { %v586_v8 = vor.u32 %v748_v6, %v585_v5  ;;  %v595_v11 = vld [vmem:[#allocation7] sm:$0xf]  ;;  %190 = vmatpush.bf16.msra.mxu2 %v604_v3  ;;  %v590_v12 = vor.u32 %v747_v9, %v587_v10  ;;  %v744_v13 = vld [vmem:[#allocation7 + $0x4] sm:$0xf0]  ;;  %v743_v14 = vld [vmem:[#allocation7 + $0x4] sm:$0xf] }
  0x1a   :  { %v597_v15 = vld [vmem:[#allocation7 + $0x8] sm:$0xf0]  ;;  %204 = vmatpush.bf16.msra.mxu3 %v608_v7  ;;  %v596_v16 = vor.u32 %v744_v13, %v595_v11  ;;  %v109_v18 = vld [vmem:[#allocation5] sm:$0xff]  ;;  %v110_v19 = vld [vmem:[#allocation5 + $0x8] sm:$0xff]  ;;  %vm128_vm0 = vcmask 130048   ;;  %vm180_vm1 = vcmask 261120  }
  0x1b   :  { %139 = vmatpush.bf16.msra.mxu0 %v586_v8  ;;  %v600_v17 = vor.u32 %v743_v14, %v597_v15  ;;  %v106_v20 = vld [vmem:[#allocation2] sm:$0xff]  ;;  %153 = vmatpush.bf16.msra.mxu1 %v590_v12  ;;  %v111_v21 = vpack.c.bf16 %v110_v19, %v109_v18  ;;  %v107_v22 = vld [vmem:[#allocation2 + $0x8] sm:$0xff]  ;;  %v665_v36 = vld [vmem:[#allocation10 + $0x60] sm:$0xf]  ;;  %s966_s26 = smov [#allocation11]   ;;  %s568_s29 = sshll.u32 %s1081_s7, 4  ;;  %s569_s29 = int_to_ptr.hbm [resolvable:$true] %s568_s29 }
  0x1c   :  { %v108_v23 = vpack.c.bf16 %v107_v22, %v106_v20  ;;  %v673_v24 = vld [vmem:[#allocation10 + $0x70] sm:$0xf]  ;;  %v764_v25 = vld [vmem:[#allocation10 + $0x74] sm:$0xf0]  ;;  %v763_v29 = vld [vmem:[#allocation10 + $0x74] sm:$0xf] }
  0x1d   :  { %191 = vmatpush.bf16.msra.mxu2 %v596_v16  ;;  %v737_v26 = vld [vmem:[#allocation10 + $0xf0] sm:$0xf]  ;;  %v674_v27 = vor.u32 %v764_v25, %v673_v24  ;;  %v780_v28 = vld [vmem:[#allocation10 + $0xf4] sm:$0xf0]  ;;  %v675_v30 = vld [vmem:[#allocation10 + $0x78] sm:$0xf0] }
  0x1e   :  { %591 = vmatmul.msk.bf16.vlgmr.msra.gmra.mxu0 %vm128_vm0, %v111_v21  ;;  %205 = vmatpush.bf16.msra.mxu3 %v600_v17  ;;  %v738_v31 = vor.u32 %v780_v28, %v737_v26  ;;  %v678_v32 = vor.u32 %v763_v29, %v675_v30  ;;  %v779_v33 = vld [vmem:[#allocation10 + $0xf4] sm:$0xf]  ;;  %v739_v34 = vld [vmem:[#allocation10 + $0xf8] sm:$0xf0]  ;;  %v762_v37 = vld [vmem:[#allocation10 + $0x64] sm:$0xf0] }
  0x1f   :  { %592 = vmatmul.msk.bf16.vlgmr.msra.gmra.mxu1 %vm128_vm0, %v111_v21  ;;  %502 = vmatpush.bf16.msrb.mxu0 %v674_v27  ;;  %v742_v35 = vor.u32 %v779_v33, %v739_v34  ;;  %v729_v38 = vld [vmem:[#allocation10 + $0xe0] sm:$0xf]  ;;  %v666_v39 = vor.u32 %v762_v37, %v665_v36  ;;  %v778_v40 = vld [vmem:[#allocation10 + $0xe4] sm:$0xf0]  ;;  %v761_v41 = vld [vmem:[#allocation10 + $0x64] sm:$0xf] }
  0x20   :  { %609 = vmatmul.msk.bf16.vlgmr.msra.gmra.mxu2 %vm180_vm1, %v108_v23  ;;  %516 = vmatpush.bf16.msrb.mxu1 %v738_v31  ;;  %v667_v42 = vld [vmem:[#allocation10 + $0x68] sm:$0xf0]  ;;  %v730_v43 = vor.u32 %v778_v40, %v729_v38  ;;  %v777_v45 = vld [vmem:[#allocation10 + $0xe4] sm:$0xf]  ;;  %v657_v48 = vld [vmem:[#allocation10 + $0x50] sm:$0xf] }
  0x21   :  { %610 = vmatmul.msk.bf16.vlgmr.msra.gmra.mxu3 %vm180_vm1, %v108_v23  ;;  %530 = vmatpush.bf16.msrb.mxu2 %v678_v32  ;;  %v670_v44 = vor.u32 %v761_v41, %v667_v42  ;;  %v731_v46 = vld [vmem:[#allocation10 + $0xe8] sm:$0xf0]  ;;  %v760_v49 = vld [vmem:[#allocation10 + $0x54] sm:$0xf0]  ;;  %v721_v50 = vld [vmem:[#allocation10 + $0xd0] sm:$0xf] }
  0x22   :  { %544 = vmatpush.bf16.msrb.mxu3 %v742_v35  ;;  %v734_v47 = vor.u32 %v777_v45, %v731_v46  ;;  %v658_v51 = vor.u32 %v760_v49, %v657_v48  ;;  %v776_v52 = vld [vmem:[#allocation10 + $0xd4] sm:$0xf0]  ;;  %v759_v53 = vld [vmem:[#allocation10 + $0x54] sm:$0xf]  ;;  %v659_v54 = vld [vmem:[#allocation10 + $0x58] sm:$0xf0] }
  0x23   :  { %503 = vmatpush.bf16.msrb.mxu0 %v666_v39  ;;  %v722_v55 = vor.u32 %v776_v52, %v721_v50  ;;  %v662_v56 = vor.u32 %v759_v53, %v659_v54  ;;  %v775_v57 = vld [vmem:[#allocation10 + $0xd4] sm:$0xf]  ;;  %v723_v58 = vld [vmem:[#allocation10 + $0xd8] sm:$0xf0]  ;;  %v1027_v59 = vld [vmem:[%s1078_s4] sm:$0x3] }
  0x24   :  { %517 = vmatpush.bf16.msrb.mxu1 %v730_v43  ;;  %v726_v60 = vor.u32 %v775_v57, %v723_v58  ;;  %v649_v61 = vld [vmem:[#allocation10 + $0x40] sm:$0xf]  ;;  %v758_v62 = vld [vmem:[#allocation10 + $0x44] sm:$0xf0]  ;;  %v757_v2 = vld [vmem:[#allocation10 + $0x44] sm:$0xf] }
  0x25   :  { %531 = vmatpush.bf16.msrb.mxu2 %v670_v44  ;;  %v713_v63 = vld [vmem:[#allocation10 + $0xc0] sm:$0xf]  ;;  %v650_v0 = vor.u32 %v758_v62, %v649_v61  ;;  %v774_v1 = vld [vmem:[#allocation10 + $0xc4] sm:$0xf0]  ;;  %v651_v3 = vld [vmem:[#allocation10 + $0x48] sm:$0xf0] }
  0x26   :  { %545 = vmatpush.bf16.msrb.mxu3 %v734_v47  ;;  %v714_v4 = vor.u32 %v774_v1, %v713_v63  ;;  %v654_v5 = vor.u32 %v757_v2, %v651_v3  ;;  %v773_v6 = vld [vmem:[#allocation10 + $0xc4] sm:$0xf]  ;;  %v715_v7 = vld [vmem:[#allocation10 + $0xc8] sm:$0xf0]  ;;  %v214_v9 = vperm.slane %v1027_v59, 0  ;;  %v215_v10 = vperm.slane %v1027_v59, 1 }
  0x27   :  { %504 = vmatpush.bf16.msrb.mxu0 %v658_v51  ;;  %v718_v11 = vor.u32 %v773_v6, %v715_v7  ;;  %v641_v13 = vld [vmem:[#allocation10 + $0x30] sm:$0xf]  ;;  %v756_v14 = vld [vmem:[#allocation10 + $0x34] sm:$0xf0]  ;;  %v755_v19 = vld [vmem:[#allocation10 + $0x34] sm:$0xf] }
  0x28   :  { %518 = vmatpush.bf16.msrb.mxu1 %v722_v55  ;;  %v705_v15 = vld [vmem:[#allocation10 + $0xb0] sm:$0xf]  ;;  %v642_v17 = vor.u32 %v756_v14, %v641_v13  ;;  %v772_v18 = vld [vmem:[#allocation10 + $0xb4] sm:$0xf0]  ;;  %v643_v20 = vld [vmem:[#allocation10 + $0x38] sm:$0xf0] }
  0x29   :  { %532 = vmatpush.bf16.msrb.mxu2 %v662_v56  ;;  %v706_v23 = vor.u32 %v772_v18, %v705_v15  ;;  %v646_v24 = vor.u32 %v755_v19, %v643_v20  ;;  %v771_v25 = vld [vmem:[#allocation10 + $0xb4] sm:$0xf]  ;;  %v707_v26 = vld [vmem:[#allocation10 + $0xb8] sm:$0xf0]  ;;  %v633_v30 = vld [vmem:[#allocation10 + $0x20] sm:$0xf] }
  0x2a   :  { %546 = vmatpush.bf16.msrb.mxu3 %v726_v60  ;;  %v710_v28 = vor.u32 %v771_v25, %v707_v26  ;;  %v754_v31 = vld [vmem:[#allocation10 + $0x24] sm:$0xf0]  ;;  %v697_v32 = vld [vmem:[#allocation10 + $0xa0] sm:$0xf]  ;;  %v753_v36 = vld [vmem:[#allocation10 + $0x24] sm:$0xf] }
  0x2b   :  { %505 = vmatpush.bf16.msrb.mxu0 %v650_v0  ;;  %v634_v34 = vor.u32 %v754_v31, %v633_v30  ;;  %v770_v35 = vld [vmem:[#allocation10 + $0xa4] sm:$0xf0]  ;;  %v635_v37 = vld [vmem:[#allocation10 + $0x28] sm:$0xf0]  ;;  %v769_v41 = vld [vmem:[#allocation10 + $0xa4] sm:$0xf] }
  0x2c   :  { %519 = vmatpush.bf16.msrb.mxu1 %v714_v4  ;;  %v698_v39 = vor.u32 %v770_v35, %v697_v32  ;;  %v638_v40 = vor.u32 %v753_v36, %v635_v37  ;;  %v699_v42 = vld [vmem:[#allocation10 + $0xa8] sm:$0xf0]  ;;  %v625_v45 = vld [vmem:[#allocation10 + $0x10] sm:$0xf]  ;;  %v752_v46 = vld [vmem:[#allocation10 + $0x14] sm:$0xf0] }
  0x2d   :  { %533 = vmatpush.bf16.msrb.mxu2 %v654_v5  ;;  %v702_v44 = vor.u32 %v769_v41, %v699_v42  ;;  %v689_v47 = vld [vmem:[#allocation10 + $0x90] sm:$0xf]  ;;  %v626_v50 = vor.u32 %v752_v46, %v625_v45  ;;  %v768_v51 = vld [vmem:[#allocation10 + $0x94] sm:$0xf0]  ;;  %v751_v52 = vld [vmem:[#allocation10 + $0x14] sm:$0xf] }
  0x2e   :  { %547 = vmatpush.bf16.msrb.mxu3 %v718_v11  ;;  %v627_v53 = vld [vmem:[#allocation10 + $0x18] sm:$0xf0]  ;;  %v690_v57 = vor.u32 %v768_v51, %v689_v47  ;;  %v767_v60 = vld [vmem:[#allocation10 + $0x94] sm:$0xf]  ;;  %v617_v1 = vld [vmem:[#allocation10] sm:$0xf] }
  0x2f   :  { %506 = vmatpush.bf16.msrb.mxu0 %v642_v17  ;;  %v630_v58 = vor.u32 %v751_v52, %v627_v53  ;;  %v691_v61 = vld [vmem:[#allocation10 + $0x98] sm:$0xf0]  ;;  %v750_v2 = vld [vmem:[#allocation10 + $0x4] sm:$0xf0]  ;;  %v681_v3 = vld [vmem:[#allocation10 + $0x80] sm:$0xf] }
  0x30   :  { %520 = vmatpush.bf16.msrb.mxu1 %v706_v23  ;;  %v694_v63 = vor.u32 %v767_v60, %v691_v61  ;;  %v618_v5 = vor.u32 %v750_v2, %v617_v1  ;;  %v766_v6 = vld [vmem:[#allocation10 + $0x84] sm:$0xf0]  ;;  %v749_v7 = vld [vmem:[#allocation10 + $0x4] sm:$0xf]  ;;  %v683_v15 = vld [vmem:[#allocation10 + $0x88] sm:$0xf0] }
  0x31   :  { %534 = vmatpush.bf16.msrb.mxu2 %v646_v24  ;;  %v682_v13 = vor.u32 %v766_v6, %v681_v3  ;;  %v765_v14 = vld [vmem:[#allocation10 + $0x84] sm:$0xf]  ;;  %s967_s30 = smov 256   ;;  %s968_s8 = smov 16  }
  0x32   :  { %548 = vmatpush.bf16.msrb.mxu3 %v710_v28  ;;  %v686_v59 = vor.u32 %v765_v14, %v683_v15 }
  0x33   :  { %507 = vmatpush.bf16.msrb.mxu0 %v634_v34 }
  0x34   :  { %521 = vmatpush.bf16.msrb.mxu1 %v698_v39 }
  0x35   :  { %535 = vmatpush.bf16.msrb.mxu2 %v638_v40 }
  0x36   :  { %549 = vmatpush.bf16.msrb.mxu3 %v702_v44 }
  0x37   :  { %508 = vmatpush.bf16.msrb.mxu0 %v626_v50 }
  0x38   :  { %522 = vmatpush.bf16.msrb.mxu1 %v690_v57 }
  0x39   :  { %536 = vmatpush.bf16.msrb.mxu2 %v630_v58 }
  0x3a   :  { %550 = vmatpush.bf16.msrb.mxu3 %v694_v63 }
  0x3b   :  { %509 = vmatpush.bf16.msrb.mxu0 %v618_v5 }
  0x3c   :  { %523 = vmatpush.bf16.msrb.mxu1 %v682_v13 }
  0x3e   :  { %551 = vmatpush.bf16.msrb.mxu3 %v686_v59 }
  0x9b   :  { %v141_v8 = vpop.f32.mrf.mxu0 }
  0x9c   :  { %v155_v12 = vpop.f32.mrf.mxu1 }
  0xa3   :  { %v193_v16 = vpop.f32.mrf.mxu2  ;;  %v143_v48 = vpop.f32.mrf.mxu0 }
  0xa4   :  { %v194_v21 = vadd.f32 %v193_v16, %v141_v8  ;;  %v207_v22 = vpop.f32.mrf.mxu3  ;;  %v157_v54 = vpop.f32.mrf.mxu1  ;;  %v619_v8 = vld [vmem:[#allocation10 + $0x8] sm:$0xf0] }
  0xa5   :  { %v208_v27 = vadd.f32 %v207_v22, %v155_v12 }
  0xa6   :  { %v1033_v29 = vadd.f32 %v214_v9, %v194_v21 }
  0xa7   :  { %v1037_v33 = vadd.f32 %v215_v10, %v208_v27 }
  0xa8   :  { %v611_v38 = vmul.f32 -1.442695, %v1033_v29 }
  0xa9   :  { %v612_v43 = vmul.f32 -1.442695, %v1037_v33 }
  0xaa   :  { %791 = vpow2.f32 %v611_v38 }
  0xab   :  { %793 = vpow2.f32 %v612_v43  ;;  %v195_v49 = vpop.f32.mrf.mxu2 }
  0xac   :  { %v196_v55 = vadd.f32 %v195_v49, %v143_v48  ;;  %v209_v56 = vpop.f32.mrf.mxu3 }
  0xad   :  { %v210_v62 = vadd.f32 %v209_v56, %v157_v54 }
  0xae   :  { %v1043_v0 = vadd.f32 %v214_v9, %v196_v55  ;;  %v622_v9 = vor.u32 %v749_v7, %v619_v8 }
  0xaf   :  { %v1047_v4 = vadd.f32 %v215_v10, %v210_v62 }
  0xb0   :  { %v792_v11 = vpop.eup %791  ;;  %v613_v12 = vmul.f32 -1.442695, %v1043_v0  ;;  %537 = vmatpush.bf16.msrb.mxu2 %v622_v9 }
  0xb1   :  { %v794_v16 = vpop.eup %793  ;;  %v234_v17 = vadd.f32 1.0, %v792_v11  ;;  %v614_v18 = vmul.f32 -1.442695, %v1047_v4 }
  0xb2   :  { %v235_v10 = vadd.f32 1.0, %v794_v16  ;;  %795 = vpow2.f32 %v613_v12 }
  0xb3   :  { %797 = vrcp.f32 %v234_v17  ;;  %vm243_vm3 = vweird.f32 %v234_v17  ;;  %v247_v36 = vand.u32 2147483647, %v234_v17  ;;  %v249_v37 = vand.u32 2147483648, %v234_v17 }
  0xb4   :  { %799 = vrcp.f32 %v235_v10  ;;  %vm258_vm4 = vweird.f32 %v235_v10  ;;  %v262_v39 = vand.u32 2147483647, %v235_v10  ;;  %v264_v44 = vand.u32 2147483648, %v235_v10 }
  0xb5   :  { %801 = vpow2.f32 %v614_v18  ;;  %vm248_vm8 = vcmp.eq.f32.partialorder %v247_v36, 8.507059e+37  ;;  %v250_v49 = vor.u32 1.1754944e-38, %v249_v37 }
  0xb6   :  { %v265_v60 = vor.u32 1.1754944e-38, %v264_v44  ;;  %vm263_vm14 = vcmp.eq.f32.partialorder %v262_v39, 8.507059e+37 }
  0xb8   :  { %v796_v19 = vpop.eup %795 }
  0xb9   :  { %v798_v20 = vpop.eup %797  ;;  %v236_v21 = vadd.f32 1.0, %v796_v19 }
  0xba   :  { %v800_v22 = vpop.eup %799  ;;  %v239_v23 = vmul.f32 %v798_v20, %v234_v17  ;;  %vm244_vm2 = vweird.f32 %v798_v20 }
  0xbb   :  { %v802_v24 = vpop.eup %801  ;;  %v254_v25 = vmul.f32 %v800_v22, %v235_v10  ;;  %803 = vrcp.f32 %v236_v21  ;;  %v279_v41 = vand.u32 2147483648, %v236_v21  ;;  %vm1051_vm5 = vmor %vm243_vm3, %vm244_vm2  ;;  %vm259_vm6 = vweird.f32 %v800_v22 }
  0xbc   :  { %v240_v26 = vsub.f32 1.0, %v239_v23  ;;  %v237_v27 = vadd.f32 1.0, %v802_v24  ;;  %v277_v48 = vand.u32 2147483647, %v236_v21  ;;  %vm273_vm9 = vweird.f32 %v236_v21  ;;  %vm1058_vm10 = vmor %vm258_vm4, %vm259_vm6 }
  0xbd   :  { %v255_v28 = vsub.f32 1.0, %v254_v25  ;;  %v280_v53 = vor.u32 1.1754944e-38, %v279_v41 }
  0xbe   :  { %v241_v30 = vmul.f32 %v798_v20, %v240_v26  ;;  %805 = vrcp.f32 %v237_v27  ;;  %v292_v54 = vand.u32 2147483647, %v237_v27  ;;  %v294_v55 = vand.u32 2147483648, %v237_v27 }
  0xbf   :  { %v256_v32 = vmul.f32 %v800_v22, %v255_v28  ;;  %vm278_vm13 = vcmp.eq.f32.partialorder %v277_v48, 8.507059e+37  ;;  %vm288_vm15 = vweird.f32 %v237_v27 }
  0xc0   :  { %v242_v34 = vadd.f32 %v798_v20, %v241_v30  ;;  %v295_v5 = vor.u32 1.1754944e-38, %v294_v55  ;;  %vm293_vm1 = vcmp.eq.f32.partialorder %v292_v54, 8.507059e+37 }
  0xc1   :  { %v804_v31 = vpop.eup %803  ;;  %v257_v43 = vadd.f32 %v800_v22, %v256_v32 }
  0xc2   :  { %v269_v35 = vmul.f32 %v804_v31, %v236_v21  ;;  %v246_v46 = vsel %vm1051_vm5, %v798_v20, %v242_v34  ;;  %vm274_vm7 = vweird.f32 %v804_v31 }
  0xc3   :  { %v251_v56 = vsel %vm248_vm8, %v250_v49, %v246_v46  ;;  %v261_v57 = vsel %vm1058_vm10, %v800_v22, %v257_v43  ;;  %vm275_vm11 = vmor %vm273_vm9, %vm274_vm7 }
  0xc4   :  { %v806_v38 = vpop.eup %805  ;;  %v270_v40 = vsub.f32 1.0, %v269_v35  ;;  %v298_v1 = vmul.f32 %v251_v56, %v1033_v29  ;;  %v266_v2 = vsel %vm263_vm14, %v265_v60, %v261_v57  ;;  %v336_v29 = vld [vmem:[%s1080_s6] sm:$0x3]  ;;  %s566_s6 = sshll.u32 %s966_s26, 4  ;;  %s567_s6 = int_to_ptr.vmem [resolvable:$true] %s566_s6 }
  0xc5   :  { %v284_v45 = vmul.f32 %v806_v38, %v237_v27  ;;  %vm289_vm12 = vweird.f32 %v806_v38  ;;  %v299_v11 = vmul.f32 %v266_v2, %v1037_v33  ;;  %v339_v16 = vperm.slane %v336_v29, 1 }
  0xc6   :  { %v271_v47 = vmul.f32 %v804_v31, %v270_v40  ;;  %vm290_vm0 = vmor %vm288_vm15, %vm289_vm12 }
  0xc7   :  { %v285_v50 = vsub.f32 1.0, %v284_v45 }
  0xc8   :  { %v272_v52 = vadd.f32 %v804_v31, %v271_v47 }
  0xc9   :  { %v286_v58 = vmul.f32 %v806_v38, %v285_v50 }
  0xca   :  { %v276_v61 = vsel %vm275_vm11, %v804_v31, %v272_v52 }
  0xcb   :  { %v281_v62 = vsel %vm278_vm13, %v280_v53, %v276_v61  ;;  %v287_v63 = vadd.f32 %v806_v38, %v286_v58 }
  0xcc   :  { %v300_v3 = vmul.f32 %v281_v62, %v1043_v0  ;;  %v338_v0 = vperm.slane %v336_v29, 0 }
  0xcd   :  { %v291_v6 = vsel %vm290_vm0, %v806_v38, %v287_v63 }
  0xce   :  { %v296_v7 = vsel %vm293_vm1, %v295_v5, %v291_v6  ;;  %v302_v8 = vpack.c.bf16 %v300_v3, %v298_v1 }
  0xcf   :  { %v301_v12 = vmul.f32 %v296_v7, %v1047_v4 }
  0xd0   :  { %510 = vmatmul.bf16.vlgmr.msrb.gmra.mxu0 %v302_v8  ;;  %538 = vmatmul.bf16.vlgmr.msrb.gmra.mxu2 %v302_v8 }
  0xd1   :  { %v303_v13 = vpack.c.bf16 %v301_v12, %v299_v11 }
  0xd3   :  { %524 = vmatmul.bf16.vlgmr.msrb.gmra.mxu1 %v303_v13  ;;  %552 = vmatmul.bf16.vlgmr.msrb.gmra.mxu3 %v303_v13 }
 0x14d   :  { %v511_v9 = vpop.f32.mrf.mxu0 }
 0x14e   :  { %v512_v14 = vadd.f32 %v511_v9, %v338_v0 }
 0x150   :  { %v525_v15 = vpop.f32.mrf.mxu1 }
 0x151   :  { %v526_v17 = vadd.f32 %v525_v15, %v512_v14 }
 0x153   :  { %558 = vst [vmem:[#allocation11] sm:$0xff] %v526_v17  ;;  %v539_v18 = vpop.f32.mrf.mxu2 }
 0x154   :  { %v540_v33 = vadd.f32 %v539_v18, %v339_v16 }
 0x155   :  { %v513_v59 = vpop.f32.mrf.mxu0 }
 0x156   :  { %v553_v4 = vpop.f32.mrf.mxu3  ;;  %v514_v10 = vadd.f32 %v513_v59, %v338_v0 }
 0x157   :  { %v554_v19 = vadd.f32 %v553_v4, %v540_v33 }
 0x158   :  { %v527_v20 = vpop.f32.mrf.mxu1 }
 0x159   :  { %559 = vst [vmem:[#allocation11 + $0x8] sm:$0xff] %v554_v19  ;;  %v528_v21 = vadd.f32 %v527_v20, %v514_v10 }
 0x15b   :  { %560 = vst [vmem:[#allocation11 + $0x10] sm:$0xff] %v528_v21  ;;  %v541_v22 = vpop.f32.mrf.mxu2 }
 0x15c   :  { %v542_v23 = vadd.f32 %v541_v22, %v339_v16 }
 0x15e   :  { %v555_v24 = vpop.f32.mrf.mxu3 }
 0x15f   :  { %v556_v25 = vadd.f32 %v555_v24, %v542_v23 }
 0x161   :  { %561 = vst [vmem:[#allocation11 + $0x18] sm:$0xff] %v556_v25 }
 0x162   :  { %574 = dma.vmem_to_hbm [thread:$0]  %s567_s6, 512, %s569_s29, [#allocation4], %s967_s30, %s967_s30, %s968_s8  }
 0x163   :  { %957 = dma.done.wait [#allocation4], 512  }
 0x164   :  { %958 = vsyncadd [#allocation4], 4294966784 }
 0x165   :  { %579 = vsyncpa [#allocation3], 1 }
 0x166   :  { %580 = vsyncpa [#allocation6], 1 }
 0x167   :  { %581 = vsyncpa [#allocation9], 1 }
 0x168   :  { %582 = vsyncpa [#allocation4], 1 }

// kernel: tpu_custom_call.1
= control target key start
LH: loop header
LB: loop body
LE: loop exit
PB: predicated region body
PF: predicated region fallthrough
CT: control target
= control target key end

     0   :  { %12 = vsyncpa [#allocation3], 0  ;;  %s1074_s0 = inlined_call_operand.hbm [shape: f32[16,32], index: 0, kind: input, shape index: {}]   ;;  %s1075_s1 = inlined_call_operand.hbm [shape: f32[16,16], index: 1, kind: input, shape index: {}]   ;;  %s1076_s2 = inlined_call_operand.hbm [shape: bf16[32,256], index: 2, kind: input, shape index: {}]   ;;  %s1077_s3 = inlined_call_operand.hbm [shape: bf16[16,256], index: 3, kind: input, shape index: {}]   ;;  %s1078_s4 = inlined_call_operand.vmem [shape: f32[1,256], index: 4, kind: input, shape index: {}]   ;;  %s1079_s5 = inlined_call_operand.hbm [shape: bf16[256,256], index: 5, kind: input, shape index: {}]   ;;  %s1080_s6 = inlined_call_operand.vmem [shape: f32[1,1,256], index: 6, kind: input, shape index: {}]   ;;  %s1081_s7 = inlined_call_operand.hbm [shape: f32[16,256], index: 7, kind: output, shape index: {}]  }
   0x1   :  { %13 = vsyncpa [#allocation6], 0 }
   0x2   :  { %14 = vsyncpa [#allocation9], 0 }
   0x3   :  { %15 = vsyncpa [#allocation4], 0  ;;  %s33_s26 = sshll.u32 %s1075_s1, 4  ;;  %s959_s27 = smov [#allocation5]   ;;  %s34_s26 = int_to_ptr.hbm [resolvable:$true] %s33_s26 }
   0x4   :  { %s35_s28 = sshll.u32 %s959_s27, 4  ;;  %s59_s8 = sshll.u32 %s1077_s3, 4  ;;  %s36_s28 = int_to_ptr.vmem [resolvable:$true] %s35_s28  ;;  %s60_s8 = int_to_ptr.hbm [resolvable:$true] %s59_s8 }
   0x5   :  { %s960_s9 = smov 128   ;;  %s961_s10 = smov 8  }
   0x6   :  { %41 = dma.hbm_to_vmem [thread:$0]  %s34_s26, 256, %s36_s28, [#allocation6], %s960_s9, %s960_s9, %s961_s10  }
   0x7   :  { %s962_s11 = smov [#allocation8]   ;;  %s20_s15 = sshll.u32 %s1074_s0, 4  ;;  %s21_s15 = int_to_ptr.hbm [resolvable:$true] %s20_s15 }
   0x8   :  { %s61_s12 = sshll.u32 %s962_s11, 4  ;;  %s46_s17 = sshll.u32 %s1076_s2, 4  ;;  %s62_s12 = int_to_ptr.vmem [resolvable:$true] %s61_s12  ;;  %s47_s17 = int_to_ptr.hbm [resolvable:$true] %s46_s17 }
   0x9   :  { %67 = dma.hbm_to_vmem [thread:$0]  %s60_s8, 256, %s62_s12, [#allocation9], %s960_s9, %s960_s9, %s961_s10  }
   0xa   :  { %s963_s18 = smov [#allocation2]   ;;  %s964_s3 = smov [#allocation7]  }
   0xb   :  { %s22_s19 = sshll.u32 %s963_s18, 4  ;;  %s48_s20 = sshll.u32 %s964_s3, 4  ;;  %s23_s19 = int_to_ptr.vmem [resolvable:$true] %s22_s19  ;;  %s49_s20 = int_to_ptr.vmem [resolvable:$true] %s48_s20 }
   0xc   :  { %28 = dma.hbm_to_vmem [thread:$0]  %s21_s15, 256, %s23_s19, [#allocation3], %s960_s9, %s960_s9, %s961_s10  }
   0xd   :  { %s74_s23 = sshll.u32 %s1079_s5, 4  ;;  %s965_s0 = smov [#allocation10]   ;;  %s75_s23 = int_to_ptr.hbm [resolvable:$true] %s74_s23 }
   0xe   :  { %54 = dma.hbm_to_vmem [thread:$0]  %s47_s17, 512, %s49_s20, [#allocation6], %s960_s9, %s960_s9, %s961_s10  }
   0xf   :  { %s76_s24 = sshll.u32 %s965_s0, 4  ;;  %s77_s24 = int_to_ptr.vmem [resolvable:$true] %s76_s24 }
  0x10   :  { %82 = dma.hbm_to_vmem [thread:$0]  %s75_s23, 4096, %s77_s24, [#allocation9], %s960_s9, %s960_s9, %s961_s10  }
  0x11   :  { %951 = dma.done.wait [#allocation3], 256  }
  0x12   :  { %952 = vsyncadd [#allocation3], 4294967040 }
  0x13   :  { %953 = dma.done.wait [#allocation6], 768  }
  0x14   :  { %954 = vsyncadd [#allocation6], 4294966528 }
  0x15   :  { %955 = dma.done.wait [#allocation9], 4352  }
  0x16   :  { %956 = vsyncadd [#allocation9], 4294962944  ;;  %v603_v0 = vld [vmem:[#allocation7 + $0x10] sm:$0xf]  ;;  %v746_v1 = vld [vmem:[#allocation7 + $0x14] sm:$0xf0] }
  0x17   :  { %v745_v2 = vld [vmem:[#allocation7 + $0x14] sm:$0xf]  ;;  %v604_v3 = vor.u32 %v746_v1, %v603_v0  ;;  %v605_v4 = vld [vmem:[#allocation7 + $0x18] sm:$0xf0]  ;;  %v585_v5 = vld [vmem:[#allocation8] sm:$0xf] }
  0x18   :  { %v748_v6 = vld [vmem:[#allocation8 + $0x4] sm:$0xf0]  ;;  %v608_v7 = vor.u32 %v745_v2, %v605_v4  ;;  %v747_v9 = vld [vmem:[#allocation8 + $0x4] sm:$0xf]  ;;  %v587_v10 = vld [vmem:[#allocation8 + $0x8] sm:$0xf0] }
  0x19   :  { %v586_v8 = vor.u32 %v748_v6, %v585_v5  ;;  %v595_v11 = vld [vmem:[#allocation7] sm:$0xf]  ;;  %190 = vmatpush.bf16.msra.mxu2 %v604_v3  ;;  %v590_v12 = vor.u32 %v747_v9, %v587_v10  ;;  %v744_v13 = vld [vmem:[#allocation7 + $0x4] sm:$0xf0]  ;;  %v743_v14 = vld [vmem:[#allocation7 + $0x4] sm:$0xf] }
  0x1a   :  { %v597_v15 = vld [vmem:[#allocation7 + $0x8] sm:$0xf0]  ;;  %204 = vmatpush.bf16.msra.mxu3 %v608_v7  ;;  %v596_v16 = vor.u32 %v744_v13, %v595_v11  ;;  %v109_v18 = vld [vmem:[#allocation5] sm:$0xff]  ;;  %v110_v19 = vld [vmem:[#allocation5 + $0x8] sm:$0xff]  ;;  %vm128_vm0 = vcmask 130048   ;;  %vm180_vm1 = vcmask 261120  }
  0x1b   :  { %139 = vmatpush.bf16.msra.mxu0 %v586_v8  ;;  %v600_v17 = vor.u32 %v743_v14, %v597_v15  ;;  %v106_v20 = vld [vmem:[#allocation2] sm:$0xff]  ;;  %153 = vmatpush.bf16.msra.mxu1 %v590_v12  ;;  %v111_v21 = vpack.c.bf16 %v110_v19, %v109_v18  ;;  %v107_v22 = vld [vmem:[#allocation2 + $0x8] sm:$0xff]  ;;  %v665_v36 = vld [vmem:[#allocation10 + $0x60] sm:$0xf]  ;;  %s966_s26 = smov [#allocation11]   ;;  %s568_s29 = sshll.u32 %s1081_s7, 4  ;;  %s569_s29 = int_to_ptr.hbm [resolvable:$true] %s568_s29 }
  0x1c   :  { %v108_v23 = vpack.c.bf16 %v107_v22, %v106_v20  ;;  %v673_v24 = vld [vmem:[#allocation10 + $0x70] sm:$0xf]  ;;  %v764_v25 = vld [vmem:[#allocation10 + $0x74] sm:$0xf0]  ;;  %v763_v29 = vld [vmem:[#allocation10 + $0x74] sm:$0xf] }
  0x1d   :  { %191 = vmatpush.bf16.msra.mxu2 %v596_v16  ;;  %v737_v26 = vld [vmem:[#allocation10 + $0xf0] sm:$0xf]  ;;  %v674_v27 = vor.u32 %v764_v25, %v673_v24  ;;  %v780_v28 = vld [vmem:[#allocation10 + $0xf4] sm:$0xf0]  ;;  %v675_v30 = vld [vmem:[#allocation10 + $0x78] sm:$0xf0] }
  0x1e   :  { %591 = vmatmul.msk.bf16.vlgmr.msra.gmra.mxu0 %vm128_vm0, %v111_v21  ;;  %205 = vmatpush.bf16.msra.mxu3 %v600_v17  ;;  %v738_v31 = vor.u32 %v780_v28, %v737_v26  ;;  %v678_v32 = vor.u32 %v763_v29, %v675_v30  ;;  %v779_v33 = vld [vmem:[#allocation10 + $0xf4] sm:$0xf]  ;;  %v739_v34 = vld [vmem:[#allocation10 + $0xf8] sm:$0xf0]  ;;  %v762_v37 = vld [vmem:[#allocation10 + $0x64] sm:$0xf0] }
  0x1f   :  { %592 = vmatmul.msk.bf16.vlgmr.msra.gmra.mxu1 %vm128_vm0, %v111_v21  ;;  %502 = vmatpush.bf16.msrb.mxu0 %v674_v27  ;;  %v742_v35 = vor.u32 %v779_v33, %v739_v34  ;;  %v729_v38 = vld [vmem:[#allocation10 + $0xe0] sm:$0xf]  ;;  %v666_v39 = vor.u32 %v762_v37, %v665_v36  ;;  %v778_v40 = vld [vmem:[#allocation10 + $0xe4] sm:$0xf0]  ;;  %v761_v41 = vld [vmem:[#allocation10 + $0x64] sm:$0xf] }
  0x20   :  { %609 = vmatmul.msk.bf16.vlgmr.msra.gmra.mxu2 %vm180_vm1, %v108_v23  ;;  %516 = vmatpush.bf16.msrb.mxu1 %v738_v31  ;;  %v667_v42 = vld [vmem:[#allocation10 + $0x68] sm:$0xf0]  ;;  %v730_v43 = vor.u32 %v778_v40, %v729_v38  ;;  %v777_v45 = vld [vmem:[#allocation10 + $0xe4] sm:$0xf]  ;;  %v657_v48 = vld [vmem:[#allocation10 + $0x50] sm:$0xf] }
  0x21   :  { %610 = vmatmul.msk.bf16.vlgmr.msra.gmra.mxu3 %vm180_vm1, %v108_v23  ;;  %530 = vmatpush.bf16.msrb.mxu2 %v678_v32  ;;  %v670_v44 = vor.u32 %v761_v41, %v667_v42  ;;  %v731_v46 = vld [vmem:[#allocation10 + $0xe8] sm:$0xf0]  ;;  %v760_v49 = vld [vmem:[#allocation10 + $0x54] sm:$0xf0]  ;;  %v721_v50 = vld [vmem:[#allocation10 + $0xd0] sm:$0xf] }
  0x22   :  { %544 = vmatpush.bf16.msrb.mxu3 %v742_v35  ;;  %v734_v47 = vor.u32 %v777_v45, %v731_v46  ;;  %v658_v51 = vor.u32 %v760_v49, %v657_v48  ;;  %v776_v52 = vld [vmem:[#allocation10 + $0xd4] sm:$0xf0]  ;;  %v759_v53 = vld [vmem:[#allocation10 + $0x54] sm:$0xf]  ;;  %v659_v54 = vld [vmem:[#allocation10 + $0x58] sm:$0xf0] }
  0x23   :  { %503 = vmatpush.bf16.msrb.mxu0 %v666_v39  ;;  %v722_v55 = vor.u32 %v776_v52, %v721_v50  ;;  %v662_v56 = vor.u32 %v759_v53, %v659_v54  ;;  %v775_v57 = vld [vmem:[#allocation10 + $0xd4] sm:$0xf]  ;;  %v723_v58 = vld [vmem:[#allocation10 + $0xd8] sm:$0xf0]  ;;  %v1027_v59 = vld [vmem:[%s1078_s4] sm:$0x3] }
  0x24   :  { %517 = vmatpush.bf16.msrb.mxu1 %v730_v43  ;;  %v726_v60 = vor.u32 %v775_v57, %v723_v58  ;;  %v649_v61 = vld [vmem:[#allocation10 + $0x40] sm:$0xf]  ;;  %v758_v62 = vld [vmem:[#allocation10 + $0x44] sm:$0xf0]  ;;  %v757_v2 = vld [vmem:[#allocation10 + $0x44] sm:$0xf] }
  0x25   :  { %531 = vmatpush.bf16.msrb.mxu2 %v670_v44  ;;  %v713_v63 = vld [vmem:[#allocation10 + $0xc0] sm:$0xf]  ;;  %v650_v0 = vor.u32 %v758_v62, %v649_v61  ;;  %v774_v1 = vld [vmem:[#allocation10 + $0xc4] sm:$0xf0]  ;;  %v651_v3 = vld [vmem:[#allocation10 + $0x48] sm:$0xf0] }
  0x26   :  { %545 = vmatpush.bf16.msrb.mxu3 %v734_v47  ;;  %v714_v4 = vor.u32 %v774_v1, %v713_v63  ;;  %v654_v5 = vor.u32 %v757_v2, %v651_v3  ;;  %v773_v6 = vld [vmem:[#allocation10 + $0xc4] sm:$0xf]  ;;  %v715_v7 = vld [vmem:[#allocation10 + $0xc8] sm:$0xf0]  ;;  %v214_v9 = vperm.slane %v1027_v59, 0  ;;  %v215_v10 = vperm.slane %v1027_v59, 1 }
  0x27   :  { %504 = vmatpush.bf16.msrb.mxu0 %v658_v51  ;;  %v718_v11 = vor.u32 %v773_v6, %v715_v7  ;;  %v641_v13 = vld [vmem:[#allocation10 + $0x30] sm:$0xf]  ;;  %v756_v14 = vld [vmem:[#allocation10 + $0x34] sm:$0xf0]  ;;  %v755_v19 = vld [vmem:[#allocation10 + $0x34] sm:$0xf] }
  0x28   :  { %518 = vmatpush.bf16.msrb.mxu1 %v722_v55  ;;  %v705_v15 = vld [vmem:[#allocation10 + $0xb0] sm:$0xf]  ;;  %v642_v17 = vor.u32 %v756_v14, %v641_v13  ;;  %v772_v18 = vld [vmem:[#allocation10 + $0xb4] sm:$0xf0]  ;;  %v643_v20 = vld [vmem:[#allocation10 + $0x38] sm:$0xf0] }
  0x29   :  { %532 = vmatpush.bf16.msrb.mxu2 %v662_v56  ;;  %v706_v23 = vor.u32 %v772_v18, %v705_v15  ;;  %v646_v24 = vor.u32 %v755_v19, %v643_v20  ;;  %v771_v25 = vld [vmem:[#allocation10 + $0xb4] sm:$0xf]  ;;  %v707_v26 = vld [vmem:[#allocation10 + $0xb8] sm:$0xf0]  ;;  %v633_v30 = vld [vmem:[#allocation10 + $0x20] sm:$0xf] }
  0x2a   :  { %546 = vmatpush.bf16.msrb.mxu3 %v726_v60  ;;  %v710_v28 = vor.u32 %v771_v25, %v707_v26  ;;  %v754_v31 = vld [vmem:[#allocation10 + $0x24] sm:$0xf0]  ;;  %v697_v32 = vld [vmem:[#allocation10 + $0xa0] sm:$0xf]  ;;  %v753_v36 = vld [vmem:[#allocation10 + $0x24] sm:$0xf] }
  0x2b   :  { %505 = vmatpush.bf16.msrb.mxu0 %v650_v0  ;;  %v634_v34 = vor.u32 %v754_v31, %v633_v30  ;;  %v770_v35 = vld [vmem:[#allocation10 + $0xa4] sm:$0xf0]  ;;  %v635_v37 = vld [vmem:[#allocation10 + $0x28] sm:$0xf0]  ;;  %v769_v41 = vld [vmem:[#allocation10 + $0xa4] sm:$0xf] }
  0x2c   :  { %519 = vmatpush.bf16.msrb.mxu1 %v714_v4  ;;  %v698_v39 = vor.u32 %v770_v35, %v697_v32  ;;  %v638_v40 = vor.u32 %v753_v36, %v635_v37  ;;  %v699_v42 = vld [vmem:[#allocation10 + $0xa8] sm:$0xf0]  ;;  %v625_v45 = vld [vmem:[#allocation10 + $0x10] sm:$0xf]  ;;  %v752_v46 = vld [vmem:[#allocation10 + $0x14] sm:$0xf0] }
  0x2d   :  { %533 = vmatpush.bf16.msrb.mxu2 %v654_v5  ;;  %v702_v44 = vor.u32 %v769_v41, %v699_v42  ;;  %v689_v47 = vld [vmem:[#allocation10 + $0x90] sm:$0xf]  ;;  %v626_v50 = vor.u32 %v752_v46, %v625_v45  ;;  %v768_v51 = vld [vmem:[#allocation10 + $0x94] sm:$0xf0]  ;;  %v751_v52 = vld [vmem:[#allocation10 + $0x14] sm:$0xf] }
  0x2e   :  { %547 = vmatpush.bf16.msrb.mxu3 %v718_v11  ;;  %v627_v53 = vld [vmem:[#allocation10 + $0x18] sm:$0xf0]  ;;  %v690_v57 = vor.u32 %v768_v51, %v689_v47  ;;  %v767_v60 = vld [vmem:[#allocation10 + $0x94] sm:$0xf]  ;;  %v617_v1 = vld [vmem:[#allocation10] sm:$0xf] }
  0x2f   :  { %506 = vmatpush.bf16.msrb.mxu0 %v642_v17  ;;  %v630_v58 = vor.u32 %v751_v52, %v627_v53  ;;  %v691_v61 = vld [vmem:[#allocation10 + $0x98] sm:$0xf0]  ;;  %v750_v2 = vld [vmem:[#allocation10 + $0x4] sm:$0xf0]  ;;  %v681_v3 = vld [vmem:[#allocation10 + $0x80] sm:$0xf] }
  0x30   :  { %520 = vmatpush.bf16.msrb.mxu1 %v706_v23  ;;  %v694_v63 = vor.u32 %v767_v60, %v691_v61  ;;  %v618_v5 = vor.u32 %v750_v2, %v617_v1  ;;  %v766_v6 = vld [vmem:[#allocation10 + $0x84] sm:$0xf0]  ;;  %v749_v7 = vld [vmem:[#allocation10 + $0x4] sm:$0xf]  ;;  %v683_v15 = vld [vmem:[#allocation10 + $0x88] sm:$0xf0] }
  0x31   :  { %534 = vmatpush.bf16.msrb.mxu2 %v646_v24  ;;  %v682_v13 = vor.u32 %v766_v6, %v681_v3  ;;  %v765_v14 = vld [vmem:[#allocation10 + $0x84] sm:$0xf]  ;;  %s967_s30 = smov 256   ;;  %s968_s8 = smov 16  }
  0x32   :  { %548 = vmatpush.bf16.msrb.mxu3 %v710_v28  ;;  %v686_v59 = vor.u32 %v765_v14, %v683_v15 }
  0x33   :  { %507 = vmatpush.bf16.msrb.mxu0 %v634_v34 }
  0x34   :  { %521 = vmatpush.bf16.msrb.mxu1 %v698_v39 }
  0x35   :  { %535 = vmatpush.bf16.msrb.mxu2 %v638_v40 }
  0x36   :  { %549 = vmatpush.bf16.msrb.mxu3 %v702_v44 }
  0x37   :  { %508 = vmatpush.bf16.msrb.mxu0 %v626_v50 }
  0x38   :  { %522 = vmatpush.bf16.msrb.mxu1 %v690_v57 }
  0x39   :  { %536 = vmatpush.bf16.msrb.mxu2 %v630_v58 }
  0x3a   :  { %550 = vmatpush.bf16.msrb.mxu3 %v694_v63 }
  0x3b   :  { %509 = vmatpush.bf16.msrb.mxu0 %v618_v5 }
  0x3c   :  { %523 = vmatpush.bf16.msrb.mxu1 %v682_v13 }
  0x3e   :  { %551 = vmatpush.bf16.msrb.mxu3 %v686_v59 }
  0x9b   :  { %v141_v8 = vpop.f32.mrf.mxu0 }
  0x9c   :  { %v155_v12 = vpop.f32.mrf.mxu1 }
  0xa3   :  { %v193_v16 = vpop.f32.mrf.mxu2  ;;  %v143_v48 = vpop.f32.mrf.mxu0 }
  0xa4   :  { %v194_v21 = vadd.f32 %v193_v16, %v141_v8  ;;  %v207_v22 = vpop.f32.mrf.mxu3  ;;  %v157_v54 = vpop.f32.mrf.mxu1  ;;  %v619_v8 = vld [vmem:[#allocation10 + $0x8] sm:$0xf0] }
  0xa5   :  { %v208_v27 = vadd.f32 %v207_v22, %v155_v12 }
  0xa6   :  { %v1033_v29 = vadd.f32 %v214_v9, %v194_v21 }
  0xa7   :  { %v1037_v33 = vadd.f32 %v215_v10, %v208_v27 }
  0xa8   :  { %v611_v38 = vmul.f32 -1.442695, %v1033_v29 }
  0xa9   :  { %v612_v43 = vmul.f32 -1.442695, %v1037_v33 }
  0xaa   :  { %791 = vpow2.f32 %v611_v38 }
  0xab   :  { %793 = vpow2.f32 %v612_v43  ;;  %v195_v49 = vpop.f32.mrf.mxu2 }
  0xac   :  { %v196_v55 = vadd.f32 %v195_v49, %v143_v48  ;;  %v209_v56 = vpop.f32.mrf.mxu3 }
  0xad   :  { %v210_v62 = vadd.f32 %v209_v56, %v157_v54 }
  0xae   :  { %v1043_v0 = vadd.f32 %v214_v9, %v196_v55  ;;  %v622_v9 = vor.u32 %v749_v7, %v619_v8 }
  0xaf   :  { %v1047_v4 = vadd.f32 %v215_v10, %v210_v62 }
  0xb0   :  { %v792_v11 = vpop.eup %791  ;;  %v613_v12 = vmul.f32 -1.442695, %v1043_v0  ;;  %537 = vmatpush.bf16.msrb.mxu2 %v622_v9 }
  0xb1   :  { %v794_v16 = vpop.eup %793  ;;  %v234_v17 = vadd.f32 1.0, %v792_v11  ;;  %v614_v18 = vmul.f32 -1.442695, %v1047_v4 }
  0xb2   :  { %v235_v10 = vadd.f32 1.0, %v794_v16  ;;  %795 = vpow2.f32 %v613_v12 }
  0xb3   :  { %797 = vrcp.f32 %v234_v17  ;;  %vm243_vm3 = vweird.f32 %v234_v17  ;;  %v247_v36 = vand.u32 2147483647, %v234_v17  ;;  %v249_v37 = vand.u32 2147483648, %v234_v17 }
  0xb4   :  { %799 = vrcp.f32 %v235_v10  ;;  %vm258_vm4 = vweird.f32 %v235_v10  ;;  %v262_v39 = vand.u32 2147483647, %v235_v10  ;;  %v264_v44 = vand.u32 2147483648, %v235_v10 }
  0xb5   :  { %801 = vpow2.f32 %v614_v18  ;;  %vm248_vm8 = vcmp.eq.f32.partialorder %v247_v36, 8.507059e+37  ;;  %v250_v49 = vor.u32 1.1754944e-38, %v249_v37 }
  0xb6   :  { %v265_v60 = vor.u32 1.1754944e-38, %v264_v44  ;;  %vm263_vm14 = vcmp.eq.f32.partialorder %v262_v39, 8.507059e+37 }
  0xb8   :  { %v796_v19 = vpop.eup %795 }
  0xb9   :  { %v798_v20 = vpop.eup %797  ;;  %v236_v21 = vadd.f32 1.0, %v796_v19 }
  0xba   :  { %v800_v22 = vpop.eup %799  ;;  %v239_v23 = vmul.f32 %v798_v20, %v234_v17  ;;  %vm244_vm2 = vweird.f32 %v798_v20 }
  0xbb   :  { %v802_v24 = vpop.eup %801  ;;  %v254_v25 = vmul.f32 %v800_v22, %v235_v10  ;;  %803 = vrcp.f32 %v236_v21  ;;  %v279_v41 = vand.u32 2147483648, %v236_v21  ;;  %vm1051_vm5 = vmor %vm243_vm3, %vm244_vm2  ;;  %vm259_vm6 = vweird.f32 %v800_v22 }
  0xbc   :  { %v240_v26 = vsub.f32 1.0, %v239_v23  ;;  %v237_v27 = vadd.f32 1.0, %v802_v24  ;;  %v277_v48 = vand.u32 2147483647, %v236_v21  ;;  %vm273_vm9 = vweird.f32 %v236_v21  ;;  %vm1058_vm10 = vmor %vm258_vm4, %vm259_vm6 }
  0xbd   :  { %v255_v28 = vsub.f32 1.0, %v254_v25  ;;  %v280_v53 = vor.u32 1.1754944e-38, %v279_v41 }
  0xbe   :  { %v241_v30 = vmul.f32 %v798_v20, %v240_v26  ;;  %805 = vrcp.f32 %v237_v27  ;;  %v292_v54 = vand.u32 2147483647, %v237_v27  ;;  %v294_v55 = vand.u32 2147483648, %v237_v27 }
  0xbf   :  { %v256_v32 = vmul.f32 %v800_v22, %v255_v28  ;;  %vm278_vm13 = vcmp.eq.f32.partialorder %v277_v48, 8.507059e+37  ;;  %vm288_vm15 = vweird.f32 %v237_v27 }
  0xc0   :  { %v242_v34 = vadd.f32 %v798_v20, %v241_v30  ;;  %v295_v5 = vor.u32 1.1754944e-38, %v294_v55  ;;  %vm293_vm1 = vcmp.eq.f32.partialorder %v292_v54, 8.507059e+37 }
  0xc1   :  { %v804_v31 = vpop.eup %803  ;;  %v257_v43 = vadd.f32 %v800_v22, %v256_v32 }
  0xc2   :  { %v269_v35 = vmul.f32 %v804_v31, %v236_v21  ;;  %v246_v46 = vsel %vm1051_vm5, %v798_v20, %v242_v34  ;;  %vm274_vm7 = vweird.f32 %v804_v31 }
  0xc3   :  { %v251_v56 = vsel %vm248_vm8, %v250_v49, %v246_v46  ;;  %v261_v57 = vsel %vm1058_vm10, %v800_v22, %v257_v43  ;;  %vm275_vm11 = vmor %vm273_vm9, %vm274_vm7 }
  0xc4   :  { %v806_v38 = vpop.eup %805  ;;  %v270_v40 = vsub.f32 1.0, %v269_v35  ;;  %v298_v1 = vmul.f32 %v251_v56, %v1033_v29  ;;  %v266_v2 = vsel %vm263_vm14, %v265_v60, %v261_v57  ;;  %v336_v29 = vld [vmem:[%s1080_s6] sm:$0x3]  ;;  %s566_s6 = sshll.u32 %s966_s26, 4  ;;  %s567_s6 = int_to_ptr.vmem [resolvable:$true] %s566_s6 }
  0xc5   :  { %v284_v45 = vmul.f32 %v806_v38, %v237_v27  ;;  %vm289_vm12 = vweird.f32 %v806_v38  ;;  %v299_v11 = vmul.f32 %v266_v2, %v1037_v33  ;;  %v339_v16 = vperm.slane %v336_v29, 1 }
  0xc6   :  { %v271_v47 = vmul.f32 %v804_v31, %v270_v40  ;;  %vm290_vm0 = vmor %vm288_vm15, %vm289_vm12 }
  0xc7   :  { %v285_v50 = vsub.f32 1.0, %v284_v45 }
  0xc8   :  { %v272_v52 = vadd.f32 %v804_v31, %v271_v47 }
  0xc9   :  { %v286_v58 = vmul.f32 %v806_v38, %v285_v50 }
  0xca   :  { %v276_v61 = vsel %vm275_vm11, %v804_v31, %v272_v52 }
  0xcb   :  { %v281_v62 = vsel %vm278_vm13, %v280_v53, %v276_v61  ;;  %v287_v63 = vadd.f32 %v806_v38, %v286_v58 }
  0xcc   :  { %v300_v3 = vmul.f32 %v281_v62, %v1043_v0  ;;  %v338_v0 = vperm.slane %v336_v29, 0 }
  0xcd   :  { %v291_v6 = vsel %vm290_vm0, %v806_v38, %v287_v63 }
  0xce   :  { %v296_v7 = vsel %vm293_vm1, %v295_v5, %v291_v6  ;;  %v302_v8 = vpack.c.bf16 %v300_v3, %v298_v1 }
  0xcf   :  { %v301_v12 = vmul.f32 %v296_v7, %v1047_v4 }
  0xd0   :  { %510 = vmatmul.bf16.vlgmr.msrb.gmra.mxu0 %v302_v8  ;;  %538 = vmatmul.bf16.vlgmr.msrb.gmra.mxu2 %v302_v8 }
  0xd1   :  { %v303_v13 = vpack.c.bf16 %v301_v12, %v299_v11 }
  0xd3   :  { %524 = vmatmul.bf16.vlgmr.msrb.gmra.mxu1 %v303_v13  ;;  %552 = vmatmul.bf16.vlgmr.msrb.gmra.mxu3 %v303_v13 }
 0x14d   :  { %v511_v9 = vpop.f32.mrf.mxu0 }
 0x14e   :  { %v512_v14 = vadd.f32 %v511_v9, %v338_v0 }
 0x150   :  { %v525_v15 = vpop.f32.mrf.mxu1 }
 0x151   :  { %v526_v17 = vadd.f32 %v525_v15, %v512_v14 }
 0x153   :  { %558 = vst [vmem:[#allocation11] sm:$0xff] %v526_v17  ;;  %v539_v18 = vpop.f32.mrf.mxu2 }
 0x154   :  { %v540_v33 = vadd.f32 %v539_v18, %v339_v16 }
 0x155   :  { %v513_v59 = vpop.f32.mrf.mxu0 }
 0x156   :  { %v553_v4 = vpop.f32.mrf.mxu3  ;;  %v514_v10 = vadd.f32 %v513_v59, %v338_v0 }
 0x157   :  { %v554_v19 = vadd.f32 %v553_v4, %v540_v33 }
 0x158   :  { %v527_v20 = vpop.f32.mrf.mxu1 }
 0x159   :  { %559 = vst [vmem:[#allocation11 + $0x8] sm:$0xff] %v554_v19  ;;  %v528_v21 = vadd.f32 %v527_v20, %v514_v10 }
 0x15b   :  { %560 = vst [vmem:[#allocation11 + $0x10] sm:$0xff] %v528_v21  ;;  %v541_v22 = vpop.f32.mrf.mxu2 }
 0x15c   :  { %v542_v23 = vadd.f32 %v541_v22, %v339_v16 }
 0x15e   :  { %v555_v24 = vpop.f32.mrf.mxu3 }
 0x15f   :  { %v556_v25 = vadd.f32 %v555_v24, %v542_v23 }
 0x161   :  { %561 = vst [vmem:[#allocation11 + $0x18] sm:$0xff] %v556_v25 }
 0x162   :  { %574 = dma.vmem_to_hbm [thread:$0]  %s567_s6, 512, %s569_s29, [#allocation4], %s967_s30, %s967_s30, %s968_s8  }
 0x163   :  { %957 = dma.done.wait [#allocation4], 512  }
 0x164   :  { %958 = vsyncadd [#allocation4], 4294966784 }
 0x165   :  { %579 = vsyncpa [#allocation3], 1 }
 0x166   :  { %580 = vsyncpa [#allocation6], 1 }
 0x167   :  { %581 = vsyncpa [#allocation9], 1 }
 0x168   :  { %582 = vsyncpa [#allocation4], 1 }

</bundles_post_ra>
